<compile_context>
chip_gen: v5e
topology: v5e:2x2
jax: 0.10.0
libtpu: 0.0.40
codegen_flags: <defaults>
</compile_context>

<pallas_src>
import functools

import jax
import jax.numpy as jnp
from jax.experimental import pallas as pl
from jax.experimental.pallas import tpu as pltpu

F_IN = 7      # input features, streamed as-is (7 == full last dim is allowed)
H1 = 128
H2 = 128
H3 = 128      # layer-3 width 64 zero-padded to 128 (ReLU(0)=0 keeps it exact)
N_OUT = 2     # true output width -- no write amplification

TM_MAX = 2048   # large tiles amortize the ~0.35us fixed cost per grid step
TM_MIN = 256    # multiple of the 256-wide v6e/v7x MXU (and 128-wide v5e MXU)


def mlp_kernel(x_ref,
               w1_ref, b1_ref,
               w2_ref, b2_ref,
               w3_ref, b3_ref,
               w4_ref, b4_ref,
               o_ref):
    # Layer 1: (TM,7) @ (7,128) in f32 (tiny K, ~2% of FLOPs) + bias + ReLU.
    h = jnp.dot(x_ref[...], w1_ref[...], preferred_element_type=jnp.float32)
    h = jnp.maximum(h + b1_ref[...], 0.0)
    # Layer 2: (TM,128) @ (128,128), bf16 operands, f32 accumulation.
    h = jnp.dot(h.astype(jnp.bfloat16), w2_ref[...],
                preferred_element_type=jnp.float32)
    h = jnp.maximum(h + b2_ref[...], 0.0)
    # Layer 3: (TM,128) @ (128,128); cols 64..127 of w3/b3 are zero.
    h = jnp.dot(h.astype(jnp.bfloat16), w3_ref[...],
                preferred_element_type=jnp.float32)
    h = jnp.maximum(h + b3_ref[...], 0.0)
    # Layer 4: (TM,128) @ (128,2); rows 64..127 of w4 are zero.
    h = jnp.dot(h.astype(jnp.bfloat16), w4_ref[...],
                preferred_element_type=jnp.float32)
    o_ref[...] = (h + b4_ref[...]).astype(o_ref.dtype)


def prepare_params(params):
    """Pad layer-3/4 params on contraction dims; cast hot weights to bf16."""
    def pad_to(a, shape):
        return jnp.pad(a, [(0, s - d) for d, s in zip(a.shape, shape)])

    return {
        "w1": params["w1"].astype(jnp.float32),                        # (7,128)   f32
        "b1": params["b1"].astype(jnp.float32),                        # (1,128)   f32
        "w2": params["w2"].astype(jnp.bfloat16),                       # (128,128) bf16
        "b2": params["b2"].astype(jnp.float32),                        # (1,128)   f32
        "w3": pad_to(params["w3"], (H2, H3)).astype(jnp.bfloat16),     # (128,64)->(128,128)
        "b3": pad_to(params["b3"], (1, H3)).astype(jnp.float32),       # (1,64)  ->(1,128)
        "w4": pad_to(params["w4"], (H3, N_OUT)).astype(jnp.bfloat16),  # (64,2)  ->(128,2)
        "b4": params["b4"].astype(jnp.float32),                        # (1,2)     f32
    }


def _pick_tm(batch):
    """Big tiles for big batches; >=2 grid steps when possible (v7x dual TC);
    never a tile wildly larger than a tiny batch."""
    tm = TM_MAX
    while tm > TM_MIN and (batch + tm - 1) // tm < 2:
        tm //= 2
    tm = min(tm, max(8, -(-batch // 8) * 8))   # batch rounded up to 8 sublanes
    return tm


@functools.partial(jax.jit, static_argnames=("tm",))
def _mlp_forward_impl(x, p, tm):
    batch = x.shape[0]
    num_blocks = pl.cdiv(batch, tm)

    pinned = lambda shape: pl.BlockSpec(shape, lambda i: (0, 0))
    in_specs = [
        pl.BlockSpec((tm, F_IN), lambda i: (i, 0)),   # x: streamed over batch
        pinned((F_IN, H1)), pinned((1, H1)),          # weights: VMEM-resident
        pinned((H1, H2)), pinned((1, H2)),
        pinned((H2, H3)), pinned((1, H3)),
        pinned((H3, N_OUT)), pinned((1, N_OUT)),
    ]
    out_spec = pl.BlockSpec((tm, N_OUT), lambda i: (i, 0))

    return pl.pallas_call(
        mlp_kernel,
        out_shape=jax.ShapeDtypeStruct((batch, N_OUT), jnp.float32),
        grid=(num_blocks,),
        in_specs=in_specs,
        out_specs=out_spec,
        compiler_params=pltpu.CompilerParams(
            dimension_semantics=("parallel",)),
    )(x, p["w1"], p["b1"], p["w2"], p["b2"], p["w3"], p["b3"], p["w4"], p["b4"])


def mlp_forward(x, padded_params):
    """x: (B, 7) float32 -> (B, 2) float32."""
    return _mlp_forward_impl(x, padded_params, _pick_tm(x.shape[0]))


def init_params(key):
    """Deterministic init mimicking torch.nn.Linear (uniform +-1/sqrt(fan_in));
    weights stored pre-transposed as [fan_in, fan_out]."""
    dims = [(7, 128), (128, 128), (128, 64), (64, 2)]
    params = {}
    keys = jax.random.split(key, 2 * len(dims))
    for i, (fan_in, fan_out) in enumerate(dims):
        bound = 1.0 / jnp.sqrt(jnp.float32(fan_in))
        params[f"w{i + 1}"] = jax.random.uniform(
            keys[2 * i], (fan_in, fan_out), minval=-bound, maxval=bound,
            dtype=jnp.float32)
        params[f"b{i + 1}"] = jax.random.uniform(
            keys[2 * i + 1], (1, fan_out), minval=-bound, maxval=bound,
            dtype=jnp.float32)
    return params


def reference_forward(x, params):
    h = jnp.maximum(x @ params["w1"] + params["b1"], 0.0)
    h = jnp.maximum(h @ params["w2"] + params["b2"], 0.0)
    h = jnp.maximum(h @ params["w3"] + params["b3"], 0.0)
    return h @ params["w4"] + params["b4"]


if __name__ == "__main__":
    key = jax.random.PRNGKey(0)
    pkey, xkey = jax.random.split(key)
    params = init_params(pkey)
    padded = prepare_params(params)

    # Small demo batch (single grid step).
    x = jax.random.normal(xkey, (8, 7), dtype=jnp.float32)
    out = jax.block_until_ready(mlp_forward(x, padded))
    ref = reference_forward(x, params)
    assert out.shape == (8, 2)
    # bf16 matmuls (f32 accumulation) => small deviation from the f32 reference.
    assert jnp.allclose(out, ref, atol=2e-2, rtol=2e-2), (
        float(jnp.max(jnp.abs(out - ref))))

    # Multi-block path with an uneven last block (masked OOB rows).
    x_big = jax.random.normal(xkey, (1000, 7), dtype=jnp.float32)
    out_big = jax.block_until_ready(mlp_forward(x_big, padded))
    ref_big = reference_forward(x_big, params)
    assert out_big.shape == (1000, 2)
    assert jnp.allclose(out_big, ref_big, atol=2e-2, rtol=2e-2), (
        float(jnp.max(jnp.abs(out_big - ref_big))))

    print("KERNEL_OK")
</pallas_src>

<mosaic_0001>
module attributes {stable_mosaic.version = 11 : i64} {
  func.func @mlp_kernel(%arg0: i32, %arg1: memref<8x7xf32, #tpu.memory_space<vmem>>, %arg2: memref<7x128xf32, #tpu.memory_space<vmem>>, %arg3: memref<1x128xf32, #tpu.memory_space<vmem>>, %arg4: memref<128x128xbf16, #tpu.memory_space<vmem>>, %arg5: memref<1x128xf32, #tpu.memory_space<vmem>>, %arg6: memref<128x128xbf16, #tpu.memory_space<vmem>>, %arg7: memref<1x128xf32, #tpu.memory_space<vmem>>, %arg8: memref<128x2xbf16, #tpu.memory_space<vmem>>, %arg9: memref<1x2xf32, #tpu.memory_space<vmem>>, %arg10: memref<8x2xf32, #tpu.memory_space<vmem>>) attributes {dimension_semantics = [#tpu.dimension_semantics<parallel>], iteration_bounds = array<i64: 1>, scalar_prefetch = 0 : i64, scratch_operands = 0 : i64, tpu.core_type = #tpu.core_type<tc>, window_params = [{transform_indices = @transform_0, window_bounds = array<i64: 8, 7>}, {pipeline_mode = #tpu.pipeline_mode<synchronous>, transform_indices = @transform_1, window_bounds = array<i64: 7, 128>}, {pipeline_mode = #tpu.pipeline_mode<synchronous>, transform_indices = @transform_2, window_bounds = array<i64: 1, 128>}, {pipeline_mode = #tpu.pipeline_mode<synchronous>, transform_indices = @transform_3, window_bounds = array<i64: 128, 128>}, {pipeline_mode = #tpu.pipeline_mode<synchronous>, transform_indices = @transform_4, window_bounds = array<i64: 1, 128>}, {pipeline_mode = #tpu.pipeline_mode<synchronous>, transform_indices = @transform_5, window_bounds = array<i64: 128, 128>}, {pipeline_mode = #tpu.pipeline_mode<synchronous>, transform_indices = @transform_6, window_bounds = array<i64: 1, 128>}, {pipeline_mode = #tpu.pipeline_mode<synchronous>, transform_indices = @transform_7, window_bounds = array<i64: 128, 2>}, {pipeline_mode = #tpu.pipeline_mode<synchronous>, transform_indices = @transform_8, window_bounds = array<i64: 1, 2>}, {transform_indices = @transform_9, window_bounds = array<i64: 8, 2>}]} {
    %c0 = arith.constant 0 : index
    %c0_0 = arith.constant 0 : index
    %0 = vector.load %arg1[%c0, %c0_0] : memref<8x7xf32, #tpu.memory_space<vmem>>, vector<8x7xf32>
    %c0_1 = arith.constant 0 : index
    %c0_2 = arith.constant 0 : index
    %1 = vector.load %arg2[%c0_1, %c0_2] : memref<7x128xf32, #tpu.memory_space<vmem>>, vector<7x128xf32>
    %cst = arith.constant dense<0.000000e+00> : vector<8x128xf32>
    %2 = tpu.matmul %0, %1, %cst {dimension_numbers = #tpu.dot_dimension_numbers<[1], [0], [0], [1], [0, 0, 1, 1], [], []>} : vector<8x7xf32>, vector<7x128xf32>, vector<8x128xf32> -> vector<8x128xf32>
    %c0_3 = arith.constant 0 : index
    %c0_4 = arith.constant 0 : index
    %3 = vector.load %arg3[%c0_3, %c0_4] : memref<1x128xf32, #tpu.memory_space<vmem>>, vector<1x128xf32>
    %4 = vector.broadcast %3 : vector<1x128xf32> to vector<8x128xf32>
    %5 = arith.addf %2, %4 : vector<8x128xf32>
    %cst_5 = arith.constant 0.000000e+00 : f32
    %6 = vector.broadcast %cst_5 : f32 to vector<8x128xf32>
    %7 = arith.maximumf %5, %6 : vector<8x128xf32>
    %8 = arith.truncf %7 : vector<8x128xf32> to vector<8x128xbf16>
    %c0_6 = arith.constant 0 : index
    %c0_7 = arith.constant 0 : index
    %9 = vector.load %arg4[%c0_6, %c0_7] : memref<128x128xbf16, #tpu.memory_space<vmem>>, vector<128x128xbf16>
    %cst_8 = arith.constant dense<0.000000e+00> : vector<8x128xf32>
    %10 = tpu.matmul %8, %9, %cst_8 {dimension_numbers = #tpu.dot_dimension_numbers<[1], [0], [0], [1], [0, 0, 1, 1], [], []>} : vector<8x128xbf16>, vector<128x128xbf16>, vector<8x128xf32> -> vector<8x128xf32>
    %c0_9 = arith.constant 0 : index
    %c0_10 = arith.constant 0 : index
    %11 = vector.load %arg5[%c0_9, %c0_10] : memref<1x128xf32, #tpu.memory_space<vmem>>, vector<1x128xf32>
    %12 = vector.broadcast %11 : vector<1x128xf32> to vector<8x128xf32>
    %13 = arith.addf %10, %12 : vector<8x128xf32>
    %cst_11 = arith.constant 0.000000e+00 : f32
    %14 = vector.broadcast %cst_11 : f32 to vector<8x128xf32>
    %15 = arith.maximumf %13, %14 : vector<8x128xf32>
    %16 = arith.truncf %15 : vector<8x128xf32> to vector<8x128xbf16>
    %c0_12 = arith.constant 0 : index
    %c0_13 = arith.constant 0 : index
    %17 = vector.load %arg6[%c0_12, %c0_13] : memref<128x128xbf16, #tpu.memory_space<vmem>>, vector<128x128xbf16>
    %cst_14 = arith.constant dense<0.000000e+00> : vector<8x128xf32>
    %18 = tpu.matmul %16, %17, %cst_14 {dimension_numbers = #tpu.dot_dimension_numbers<[1], [0], [0], [1], [0, 0, 1, 1], [], []>} : vector<8x128xbf16>, vector<128x128xbf16>, vector<8x128xf32> -> vector<8x128xf32>
    %c0_15 = arith.constant 0 : index
    %c0_16 = arith.constant 0 : index
    %19 = vector.load %arg7[%c0_15, %c0_16] : memref<1x128xf32, #tpu.memory_space<vmem>>, vector<1x128xf32>
    %20 = vector.broadcast %19 : vector<1x128xf32> to vector<8x128xf32>
    %21 = arith.addf %18, %20 : vector<8x128xf32>
    %cst_17 = arith.constant 0.000000e+00 : f32
    %22 = vector.broadcast %cst_17 : f32 to vector<8x128xf32>
    %23 = arith.maximumf %21, %22 : vector<8x128xf32>
    %24 = arith.truncf %23 : vector<8x128xf32> to vector<8x128xbf16>
    %c0_18 = arith.constant 0 : index
    %c0_19 = arith.constant 0 : index
    %25 = vector.load %arg8[%c0_18, %c0_19] : memref<128x2xbf16, #tpu.memory_space<vmem>>, vector<128x2xbf16>
    %cst_20 = arith.constant dense<0.000000e+00> : vector<8x2xf32>
    %26 = tpu.matmul %24, %25, %cst_20 {dimension_numbers = #tpu.dot_dimension_numbers<[1], [0], [0], [1], [0, 0, 1, 1], [], []>} : vector<8x128xbf16>, vector<128x2xbf16>, vector<8x2xf32> -> vector<8x2xf32>
    %c0_21 = arith.constant 0 : index
    %c0_22 = arith.constant 0 : index
    %27 = vector.load %arg9[%c0_21, %c0_22] : memref<1x2xf32, #tpu.memory_space<vmem>>, vector<1x2xf32>
    %28 = vector.broadcast %27 : vector<1x2xf32> to vector<8x2xf32>
    %29 = arith.addf %26, %28 : vector<8x2xf32>
    %c0_23 = arith.constant 0 : index
    %c0_24 = arith.constant 0 : index
    %30 = vector.load %arg10[%c0_23, %c0_24] : memref<8x2xf32, #tpu.memory_space<vmem>>, vector<8x2xf32>
    tpu.vector_store %arg10[%c0_23, %c0_24], %29 {strides = array<i32>} : memref<8x2xf32, #tpu.memory_space<vmem>>, vector<8x2xf32>,
    return
  }
  func.func @transform_0(%arg0: i32) -> (i32, i32) {
    %c0_i32 = arith.constant 0 : i32
    %c0_i32_0 = arith.constant 0 : i32
    return %arg0, %c0_i32 : i32, i32
  }
  func.func @transform_1(%arg0: i32) -> (i32, i32) {
    %c0_i32 = arith.constant 0 : i32
    %c0_i32_0 = arith.constant 0 : i32
    %c0_i32_1 = arith.constant 0 : i32
    return %c0_i32, %c0_i32_0 : i32, i32
  }
  func.func @transform_2(%arg0: i32) -> (i32, i32) {
    %c0_i32 = arith.constant 0 : i32
    %c0_i32_0 = arith.constant 0 : i32
    %c0_i32_1 = arith.constant 0 : i32
    return %c0_i32, %c0_i32_0 : i32, i32
  }
  func.func @transform_3(%arg0: i32) -> (i32, i32) {
    %c0_i32 = arith.constant 0 : i32
    %c0_i32_0 = arith.constant 0 : i32
    %c0_i32_1 = arith.constant 0 : i32
    return %c0_i32, %c0_i32_0 : i32, i32
  }
  func.func @transform_4(%arg0: i32) -> (i32, i32) {
    %c0_i32 = arith.constant 0 : i32
    %c0_i32_0 = arith.constant 0 : i32
    %c0_i32_1 = arith.constant 0 : i32
    return %c0_i32, %c0_i32_0 : i32, i32
  }
  func.func @transform_5(%arg0: i32) -> (i32, i32) {
    %c0_i32 = arith.constant 0 : i32
    %c0_i32_0 = arith.constant 0 : i32
    %c0_i32_1 = arith.constant 0 : i32
    return %c0_i32, %c0_i32_0 : i32, i32
  }
  func.func @transform_6(%arg0: i32) -> (i32, i32) {
    %c0_i32 = arith.constant 0 : i32
    %c0_i32_0 = arith.constant 0 : i32
    %c0_i32_1 = arith.constant 0 : i32
    return %c0_i32, %c0_i32_0 : i32, i32
  }
  func.func @transform_7(%arg0: i32) -> (i32, i32) {
    %c0_i32 = arith.constant 0 : i32
    %c0_i32_0 = arith.constant 0 : i32
    %c0_i32_1 = arith.constant 0 : i32
    return %c0_i32, %c0_i32_0 : i32, i32
  }
  func.func @transform_8(%arg0: i32) -> (i32, i32) {
    %c0_i32 = arith.constant 0 : i32
    %c0_i32_0 = arith.constant 0 : i32
    %c0_i32_1 = arith.constant 0 : i32
    return %c0_i32, %c0_i32_0 : i32, i32
  }
  func.func @transform_9(%arg0: i32) -> (i32, i32) {
    %c0_i32 = arith.constant 0 : i32
    %c0_i32_0 = arith.constant 0 : i32
    return %arg0, %c0_i32 : i32, i32
  }
}

</mosaic_0001>

<bundles_post_ra>
// kernel: _mlp_forward_impl.1
= control target key start
LH: loop header
LB: loop body
LE: loop exit
PB: predicated region body
PF: predicated region fallthrough
CT: control target
= control target key end

     0   :  { %14 = vsyncpa [#allocation3], 0  ;;  %s743_s0 = inlined_call_operand.hbm [shape: f32[8,7], index: 0, kind: input, shape index: {}]   ;;  %s744_s1 = inlined_call_operand.hbm [shape: f32[7,128], index: 1, kind: input, shape index: {}]   ;;  %s745_s2 = inlined_call_operand.vmem [shape: f32[1,128], index: 2, kind: input, shape index: {}]   ;;  %s746_s3 = inlined_call_operand.vmem [shape: bf16[128,128], index: 3, kind: input, shape index: {}]   ;;  %s747_s4 = inlined_call_operand.hbm [shape: f32[1,128], index: 4, kind: input, shape index: {}]   ;;  %s748_s5 = inlined_call_operand.hbm [shape: bf16[128,128], index: 5, kind: input, shape index: {}]   ;;  %s749_s6 = inlined_call_operand.vmem [shape: f32[1,128], index: 6, kind: input, shape index: {}]   ;;  %s750_s7 = inlined_call_operand.vmem [shape: bf16[128,2], index: 7, kind: input, shape index: {}]   ;;  %s751_s8 = inlined_call_operand.vmem [shape: f32[1,2], index: 8, kind: input, shape index: {}]   ;;  %s752_s9 = inlined_call_operand.vmem [shape: f32[8,2], index: 9, kind: output, shape index: {}]  }
   0x1   :  { %15 = vsyncpa [#allocation5], 0  ;;  %s33_s11 = sshll.u32 %s744_s1, 4  ;;  %s34_s11 = int_to_ptr.hbm [resolvable:$true] %s33_s11 }
   0x2   :  { %16 = vsyncpa [#allocation8], 0  ;;  %s615_s12 = smov [#allocation4]   ;;  %s22_s16 = sshll.u32 %s743_s0, 4  ;;  %s23_s16 = int_to_ptr.hbm [resolvable:$true] %s22_s16 }
   0x3   :  { %s35_s13 = sshll.u32 %s615_s12, 4  ;;  %s616_s17 = smov [#allocation2]   ;;  %s36_s13 = int_to_ptr.vmem [resolvable:$true] %s35_s13 }
   0x4   :  { %38 = dma.hbm_to_vmem [thread:$0]  %s34_s11, 128, %s36_s13, [#allocation5]  }
   0x5   :  { %s24_s18 = sshll.u32 %s616_s17, 4  ;;  %s48_s21 = sshll.u32 %s747_s4, 4  ;;  %s25_s18 = int_to_ptr.vmem [resolvable:$true] %s24_s18  ;;  %s49_s21 = int_to_ptr.hbm [resolvable:$true] %s48_s21 }
   0x6   :  { %27 = dma.hbm_to_vmem [thread:$0]  %s23_s16, 128, %s25_s18, [#allocation3]  }
   0x7   :  { %s58_s23 = sshll.u32 %s748_s5, 4  ;;  %s617_s24 = smov [#allocation6]   ;;  %s59_s23 = int_to_ptr.hbm [resolvable:$true] %s58_s23 }
   0x8   :  { %s50_s25 = sshll.u32 %s617_s24, 4  ;;  %s618_s0 = smov [#allocation7]   ;;  %s51_s25 = int_to_ptr.vmem [resolvable:$true] %s50_s25 }
   0x9   :  { %53 = dma.hbm_to_vmem [thread:$0]  %s49_s21, 16, %s51_s25, [#allocation5]  }
   0xa   :  { %s60_s26 = sshll.u32 %s618_s0, 4  ;;  %s619_s27 = smov 64   ;;  %s61_s26 = int_to_ptr.vmem [resolvable:$true] %s60_s26 }
   0xb   :  { %s620_s28 = smov 4  }
   0xc   :  { %66 = dma.hbm_to_vmem [thread:$0]  %s59_s23, 1024, %s61_s26, [#allocation8], %s619_s27, %s619_s27, %s620_s28  }
   0xd   :  { %609 = dma.done.wait [#allocation3], 128  }
   0xe   :  { %610 = vsyncadd [#allocation3], 4294967168 }
   0xf   :  { %611 = dma.done.wait [#allocation5], 144  }
  0x10   :  { %612 = vsyncadd [#allocation5], 4294967152 }
  0x11   :  { %613 = dma.done.wait [#allocation8], 1024  }
  0x12   :  { %614 = vsyncadd [#allocation8], 4294966272  ;;  %vm99_vm0 = vcmask 1046528   ;;  %vm95_vm1 = vcmask 56320   ;;  %v90_v0 = vld [vmem:[#allocation4] sm:$0x7f] }
  0x13   :  { %v89_v1 = vld [vmem:[#allocation2] sm:$0xff]  ;;  %v486_v2 = vld [vmem:[%s746_s3 + $0x38] sm:$0xff]  ;;  %381 = vmatpush.msk.msra.mxu0 %vm99_vm0, %v90_v0  ;;  %v485_v3 = vld [vmem:[%s746_s3 + $0x30] sm:$0xff]  ;;  %vm372_vm2 = vcmask 15360  }
  0x14   :  { %382 = vmatmul.msk.f32.vlgmr.msra.gmra.mxu0 %vm95_vm1, %v89_v1  ;;  %193 = vmatpush.bf16.msra.mxu1 %v486_v2  ;;  %v484_v4 = vld [vmem:[%s746_s3 + $0x28] sm:$0xff]  ;;  %v483_v5 = vld [vmem:[%s746_s3 + $0x20] sm:$0xff]  ;;  %v482_v6 = vld [vmem:[%s746_s3 + $0x18] sm:$0xff] }
  0x15   :  { %v481_v7 = vld [vmem:[%s746_s3 + $0x10] sm:$0xff]  ;;  %v480_v8 = vld [vmem:[%s746_s3 + $0x8] sm:$0xff]  ;;  %v479_v9 = vld [vmem:[%s746_s3] sm:$0xff] }
  0x16   :  { %v494_v10 = vld [vmem:[#allocation7 + $0x38] sm:$0xff]  ;;  %v493_v11 = vld [vmem:[#allocation7 + $0x30] sm:$0xff]  ;;  %v492_v12 = vld [vmem:[#allocation7 + $0x28] sm:$0xff] }
  0x17   :  { %276 = vmatpush.bf16.msra.mxu2 %v494_v10  ;;  %v491_v13 = vld [vmem:[#allocation7 + $0x20] sm:$0xff]  ;;  %v490_v14 = vld [vmem:[#allocation7 + $0x18] sm:$0xff]  ;;  %v489_v15 = vld [vmem:[#allocation7 + $0x10] sm:$0xff] }
  0x18   :  { %194 = vmatpush.bf16.msra.mxu1 %v485_v3  ;;  %v509_v16 = vld [vmem:[%s745_s2] ss:$0 sm:$0xff]  ;;  %v487_v22 = vld [vmem:[#allocation7] sm:$0xff]  ;;  %v500_v25 = vld [vmem:[%s750_s7 + $0x28] sm:$0xff] }
  0x19   :  { %v488_v21 = vld [vmem:[#allocation7 + $0x8] sm:$0xff]  ;;  %v501_v24 = vld [vmem:[%s750_s7 + $0x30] sm:$0xff]  ;;  %v496_v35 = vld [vmem:[%s750_s7 + $0x8] sm:$0xff] }
  0x1a   :  { %v502_v23 = vld [vmem:[%s750_s7 + $0x38] sm:$0xff]  ;;  %v499_v26 = vld [vmem:[%s750_s7 + $0x20] sm:$0xff]  ;;  %v497_v28 = vld [vmem:[%s750_s7 + $0x10] sm:$0xff] }
  0x1b   :  { %277 = vmatpush.bf16.msra.mxu2 %v493_v11  ;;  %359 = vmatpush.bf16.msra.mxu3 %v502_v23  ;;  %v498_v27 = vld [vmem:[%s750_s7 + $0x18] sm:$0xff]  ;;  %v510_v29 = vld [vmem:[#allocation6] ss:$0 sm:$0xff]  ;;  %v495_v36 = vld [vmem:[%s750_s7] sm:$0xff] }
  0x1c   :  { %195 = vmatpush.bf16.msra.mxu1 %v484_v4  ;;  %v511_v37 = vld [vmem:[%s749_s6] ss:$0 sm:$0xff] }
  0x1d   :  { %v512_v43 = vld [vmem:[%s751_s8] ss:$0 sm:$0xff] }
  0x1f   :  { %278 = vmatpush.bf16.msra.mxu2 %v492_v12  ;;  %360 = vmatpush.bf16.msra.mxu3 %v501_v24 }
  0x20   :  { %196 = vmatpush.bf16.msra.mxu1 %v483_v5 }
  0x23   :  { %279 = vmatpush.bf16.msra.mxu2 %v491_v13  ;;  %361 = vmatpush.bf16.msra.mxu3 %v500_v25 }
  0x24   :  { %197 = vmatpush.bf16.msra.mxu1 %v482_v6 }
  0x27   :  { %280 = vmatpush.bf16.msra.mxu2 %v490_v14  ;;  %362 = vmatpush.bf16.msra.mxu3 %v499_v26 }
  0x28   :  { %198 = vmatpush.bf16.msra.mxu1 %v481_v7 }
  0x2b   :  { %281 = vmatpush.bf16.msra.mxu2 %v489_v15  ;;  %363 = vmatpush.bf16.msra.mxu3 %v498_v27 }
  0x2c   :  { %199 = vmatpush.bf16.msra.mxu1 %v480_v8 }
  0x2f   :  { %282 = vmatpush.bf16.msra.mxu2 %v488_v21  ;;  %364 = vmatpush.bf16.msra.mxu3 %v497_v28 }
  0x30   :  { %200 = vmatpush.bf16.msra.mxu1 %v479_v9 }
  0x33   :  { %283 = vmatpush.bf16.msra.mxu2 %v487_v22  ;;  %365 = vmatpush.bf16.msra.mxu3 %v496_v35 }
  0x37   :  { %366 = vmatpush.bf16.msra.mxu3 %v495_v36 }
  0x91   :  { %v120_v17 = vpop.f32.mrf.mxu0 }
  0x92   :  { %v121_v18 = vadd.f32 %v509_v16, %v120_v17 }
  0x94   :  { %v123_v19 = vmax.f32 %v121_v18, 0.0 }
  0x96   :  { %v124_v20 = vpack.c.bf16 %v123_v19, %v123_v19 }
  0x98   :  { %201 = vmatmul.bf16.vlgmr.msra.gmra.mxu1 %v124_v20 }
 0x115   :  { %v202_v30 = vpop.f32.mrf.mxu1 }
 0x116   :  { %v203_v31 = vadd.f32 %v510_v29, %v202_v30 }
 0x118   :  { %v206_v32 = vmax.f32 %v203_v31, 0.0 }
 0x11a   :  { %v207_v33 = vpack.c.bf16 %v206_v32, %v206_v32 }
 0x11c   :  { %284 = vmatmul.bf16.vlgmr.msra.gmra.mxu2 %v207_v33 }
 0x11d   :  { %v204_v34 = vpop.f32.mrf.mxu1 }
 0x19f   :  { %v285_v38 = vpop.f32.mrf.mxu2 }
 0x1a0   :  { %v286_v39 = vadd.f32 %v511_v37, %v285_v38 }
 0x1a2   :  { %v289_v40 = vmax.f32 %v286_v39, 0.0 }
 0x1a4   :  { %v290_v41 = vpack.c.bf16 %v289_v40, %v289_v40 }
 0x1a6   :  { %367 = vmatmul.bf16.vlgmr.msra.gmra.mxu3 %v290_v41 }
 0x1a7   :  { %v287_v42 = vpop.f32.mrf.mxu2 }
 0x229   :  { %v368_v44 = vpop.f32.mrf.mxu3 }
 0x22a   :  { %v369_v45 = vadd.f32 %v512_v43, %v368_v44 }
 0x22c   :  { %373 = vst.msk [vmem:[%s752_s9] sm:$0xff] %vm372_vm2, %v369_v45 }
 0x231   :  { %v370_v46 = vpop.f32.mrf.mxu3 }
 0x232   :  { %378 = vsyncpa [#allocation3], 1 }
 0x233   :  { %379 = vsyncpa [#allocation5], 1 }
 0x234   :  { %380 = vsyncpa [#allocation8], 1 }

</bundles_post_ra>
